<compile_context>
chip_gen: v5e
topology: v5e:2x2
jax: 0.10.0
libtpu: 0.0.40
codegen_flags: <defaults>
</compile_context>

<pallas_src>
import jax
import jax.numpy as jnp
from jax import lax
from jax.experimental import pallas as pl
from jax.experimental.pallas import tpu as pltpu

_LANES = 128


def _round_up(a, b):
    return (a + b - 1) // b * b


def _make_stats_kernel(c, tile_hw, k_per_split, hw_true):
    """Streams (1, C, tile_hw) blocks; accumulates lane-wide sum / sum-of-squares
    in VMEM scratch; reduces across lanes once at k==last and writes the
    per-(batch, split) partial (sum, sumsq) rows."""
    n_chunks = tile_hw // _LANES
    unroll = min(n_chunks, 8)

    def _accumulate(x_ref, sum_ref, sq_ref, start, masked):
        if masked:
            lane_iota = lax.broadcasted_iota(jnp.int32, (1, 1, _LANES), 2)

        def body(j, carry):
            acc_s, acc_q = carry
            off = pl.multiple_of(j * _LANES, _LANES)
            xj = x_ref[:, :, pl.ds(off, _LANES)].astype(jnp.float32)  # (1, C, 128)
            if masked:
                valid = hw_true - (start + j * _LANES)
                xj = jnp.where(lane_iota < valid, xj, 0.0)
            return acc_s + xj, acc_q + xj * xj

        acc_s, acc_q = lax.fori_loop(
            0, n_chunks, body, (sum_ref[...], sq_ref[...]), unroll=unroll)
        sum_ref[...] = acc_s
        sq_ref[...] = acc_q

    def kernel(x_ref, out_ref, sum_ref, sq_ref):
        s = pl.program_id(1)
        k = pl.program_id(2)

        @pl.when(k == 0)
        def _init():
            sum_ref[...] = jnp.zeros_like(sum_ref)
            sq_ref[...] = jnp.zeros_like(sq_ref)

        start = (s * k_per_split + k) * tile_hw       # logical element offset
        interior = (start + tile_hw) <= hw_true       # fully in-bounds tile?

        @pl.when(interior)
        def _fast():
            _accumulate(x_ref, sum_ref, sq_ref, start, masked=False)

        @pl.when(jnp.logical_not(interior))
        def _edge():
            _accumulate(x_ref, sum_ref, sq_ref, start, masked=True)

        @pl.when(k == k_per_split - 1)
        def _finalize():
            out_ref[:, 0, 0, :] = jnp.sum(sum_ref[...], axis=-1)   # (1, C)
            out_ref[:, 0, 1, :] = jnp.sum(sq_ref[...], axis=-1)    # (1, C)

    return kernel


def _branch_mlp(v, w_a, b_a, w_b, b_b):
    """Conv1x1 -> ReLU -> Conv1x1 -> ReLU -> Sigmoid on (B, C) vectors."""
    h = jnp.maximum(v @ w_a + b_a, 0.0)
    o = jnp.maximum(h @ w_b + b_b, 0.0)
    return jax.nn.sigmoid(o)


def coff_conv(x_nchw, params, *, tile_hw=None, n_split=2, per_buffer_bytes=None):
    """x_nchw: (B, C, H, W).  Returns (B, C, 1, 1) like the PyTorch module."""
    w1, b1, w2, b2, w3, b3, w4, b4 = params
    B, C, H, W = x_nchw.shape
    HW = H * W
    itemsize = jnp.dtype(x_nchw.dtype).itemsize

    # Generation-aware buffer budget (v7x: 64 MiB physical VMEM; v5e/v6e: 128 MiB).
    if per_buffer_bytes is None:
        try:
            vmem_cap = int(pltpu.get_tpu_info().vmem_capacity_bytes)
        except Exception:
            vmem_cap = 64 * 1024 * 1024
        per_buffer_bytes = (8 if vmem_cap <= 64 * 1024 * 1024 else 12) * 1024 * 1024
    vmem_limit = int(min(per_buffer_bytes * 4, 48 * 1024 * 1024))

    # Split the reduction across a second parallel axis only when there is
    # enough work for both TensorCores (v7x megacore; harmless on v5e/v6e).
    n_split = max(1, int(n_split))
    if pl.cdiv(HW, _LANES) < n_split:
        n_split = 1

    # Even-split HW into lane-aligned tiles under the per-buffer VMEM budget.
    if tile_hw is None:
        t_cap = max(512, (per_buffer_bytes // max(1, C * itemsize)) // _LANES * _LANES)
        min_tiles = pl.cdiv(HW, t_cap)
    else:
        tile_hw = max(_LANES, _round_up(int(tile_hw), _LANES))
        min_tiles = pl.cdiv(HW, tile_hw)
    num_k_total = _round_up(max(min_tiles, n_split), n_split)
    tile_hw = _round_up(pl.cdiv(HW, num_k_total), _LANES)
    k_per_split = num_k_total // n_split
    n_blocks_real = pl.cdiv(HW, tile_hw)   # blocks that actually exist in HBM

    # No wrapper-side padding: merging trailing dims is a free reshape; the
    # ragged tail / logically-out-of-range tiles are masked inside the kernel.
    x3 = x_nchw.reshape(B, C, HW)

    if num_k_total == n_blocks_real:
        x_map = lambda b, s, k: (b, 0, s * k_per_split + k)
    else:
        last = n_blocks_real - 1
        x_map = lambda b, s, k: (b, 0, jnp.minimum(s * k_per_split + k, last))

    kernel = _make_stats_kernel(C, tile_hw, k_per_split, HW)

    grid_spec = pltpu.PrefetchScalarGridSpec(
        num_scalar_prefetch=0,
        grid=(B, n_split, k_per_split),
        in_specs=[pl.BlockSpec((1, C, tile_hw), x_map)],
        out_specs=pl.BlockSpec((1, 1, 2, C), lambda b, s, k: (b, s, 0, 0)),
        scratch_shapes=[
            pltpu.VMEM((1, C, _LANES), jnp.float32),   # lane-wide running sum
            pltpu.VMEM((1, C, _LANES), jnp.float32),   # lane-wide running sum-of-squares
        ],
    )

    cost = pl.CostEstimate(
        flops=int(3 * B * C * num_k_total * tile_hw),
        transcendentals=0,
        bytes_accessed=int(B * C * HW * itemsize + B * n_split * 2 * C * 4),
    )

    parts = pl.pallas_call(
        kernel,
        out_shape=jax.ShapeDtypeStruct((B, n_split, 2, C), jnp.float32),
        grid_spec=grid_spec,
        compiler_params=pltpu.CompilerParams(
            dimension_semantics=("parallel", "parallel", "arbitrary"),
            vmem_limit_bytes=vmem_limit,
        ),
        cost_estimate=cost,
    )(x3)

    # Combine per-split partials and run the two tiny 1x1-conv MLP branches in
    # plain XLA (hoisted out of the kernel; cost is negligible vs. the stream).
    sums = jnp.sum(parts, axis=1)                         # (B, 2, C)
    inv_hw = 1.0 / float(HW)
    mean = sums[:, 0] * inv_hw
    var = jnp.maximum(sums[:, 1] * inv_hw - mean * mean, 0.0)
    stdv = jnp.sqrt(var)

    upper = _branch_mlp(mean, w1, b1, w2, b2)
    lower = _branch_mlp(stdv, w3, b3, w4, b4)
    out = (upper + lower) * 0.5
    return out.astype(x_nchw.dtype).reshape(B, C, 1, 1)


def coff_conv_ref(x_nchw, params):
    """Pure-JAX reference mirroring the PyTorch CoffConv forward."""
    w1, b1, w2, b2, w3, b3, w4, b4 = params
    B, C, H, W = x_nchw.shape
    x = x_nchw.astype(jnp.float32)
    mean = jnp.mean(x, axis=(2, 3))                                  # (B, C)
    var = jnp.mean((x - mean[:, :, None, None]) ** 2, axis=(2, 3))   # population
    stdv = jnp.sqrt(var)
    upper = _branch_mlp(mean, w1, b1, w2, b2)
    lower = _branch_mlp(stdv, w3, b3, w4, b4)
    return (((upper + lower) / 2.0).astype(x_nchw.dtype)).reshape(B, C, 1, 1)


def make_params(key, n_feats):
    """Deterministic synthetic weights.  1x1 conv weight (O, I, 1, 1) is stored
    transposed as (I, O) so the branch does v @ w; biases stored as (1, O)."""
    ch = n_feats // 8
    ks = jax.random.split(key, 8)

    def w(k, i, o):
        return jax.random.normal(k, (i, o), jnp.float32) * (1.0 / jnp.sqrt(i))

    def b(k, o):
        return jax.random.normal(k, (1, o), jnp.float32) * 0.1

    w1, b1 = w(ks[0], n_feats, ch), b(ks[1], ch)
    w2, b2 = w(ks[2], ch, n_feats), b(ks[3], n_feats)
    w3, b3 = w(ks[4], n_feats, ch), b(ks[5], ch)
    w4, b4 = w(ks[6], ch, n_feats), b(ks[7], n_feats)
    return (w1, b1, w2, b2, w3, b3, w4, b4)


if __name__ == "__main__":
    key = jax.random.PRNGKey(0)
    kx, kp, kx2, kx3 = jax.random.split(key, 4)

    B, n_feats, H, W = 2, 32, 16, 16
    x = jax.random.normal(kx, (B, n_feats, H, W), jnp.float32)
    params = make_params(kp, n_feats)

    out = jax.block_until_ready(coff_conv(x, params))
    ref = coff_conv_ref(x, params)
    assert out.shape == (B, n_feats, 1, 1)
    err = float(jnp.max(jnp.abs(out - ref)))
    assert err < 2e-5, f"max err {err}"

    # Ragged spatial size (24*24 = 576, not a multiple of 128) with a forced
    # small tile -> multi-tile reduction, masked tail and clamped OOB block.
    H2, W2 = 24, 24
    x2 = jax.random.normal(kx2, (B, n_feats, H2, W2), jnp.float32)
    out2 = jax.block_until_ready(coff_conv(x2, params, tile_hw=128))
    ref2 = coff_conv_ref(x2, params)
    err2 = float(jnp.max(jnp.abs(out2 - ref2)))
    assert err2 < 2e-5, f"max err {err2}"

    # Batch-1 path (exercises the 2-way split of the reduction / v7x megacore).
    x3 = jax.random.normal(kx3, (1, n_feats, H2, W2), jnp.float32)
    out3 = jax.block_until_ready(coff_conv(x3, params))
    ref3 = coff_conv_ref(x3, params)
    err3 = float(jnp.max(jnp.abs(out3 - ref3)))
    assert err3 < 2e-5, f"max err {err3}"

    print("KERNEL_OK")
</pallas_src>

<mosaic_0001>
module attributes {stable_mosaic.version = 11 : i64} {
  func.func @kernel(%arg0: i32, %arg1: i32, %arg2: i32, %arg3: memref<1x32x128xf32, #tpu.memory_space<vmem>>, %arg4: memref<1x1x2x32xf32, #tpu.memory_space<vmem>>, %arg5: memref<1x32x128xf32, #tpu.memory_space<vmem>>, %arg6: memref<1x32x128xf32, #tpu.memory_space<vmem>>) attributes {dimension_semantics = [#tpu.dimension_semantics<parallel>, #tpu.dimension_semantics<parallel>, #tpu.dimension_semantics<arbitrary>], iteration_bounds = array<i64: 2, 2, 1>, scalar_prefetch = 0 : i64, scratch_operands = 2 : i64, tpu.core_type = #tpu.core_type<tc>, window_params = [{transform_indices = @transform_0, window_bounds = array<i64: 1, 32, 128>}, {transform_indices = @transform_1, window_bounds = array<i64: 1, 1, 2, 32>}]} {
    %c0_i32 = arith.constant 0 : i32
    %0 = arith.cmpi eq, %arg2, %c0_i32 : i32
    %1 = arith.extui %0 : i1 to i32
    %c0_i32_0 = arith.constant 0 : i32
    %2 = arith.cmpi ne, %1, %c0_i32_0 : i32
    scf.if %2 {
      %cst = arith.constant 0.000000e+00 : f32
      %16 = vector.broadcast %cst : f32 to vector<1x32x128xf32>
      %c0 = arith.constant 0 : index
      %c0_6 = arith.constant 0 : index
      %c0_7 = arith.constant 0 : index
      %17 = vector.load %arg5[%c0, %c0_6, %c0_7] : memref<1x32x128xf32, #tpu.memory_space<vmem>>, vector<1x32x128xf32>
      tpu.vector_store %arg5[%c0, %c0_6, %c0_7], %16 {strides = array<i32>} : memref<1x32x128xf32, #tpu.memory_space<vmem>>, vector<1x32x128xf32>,
      %cst_8 = arith.constant 0.000000e+00 : f32
      %18 = vector.broadcast %cst_8 : f32 to vector<1x32x128xf32>
      %c0_9 = arith.constant 0 : index
      %c0_10 = arith.constant 0 : index
      %c0_11 = arith.constant 0 : index
      %19 = vector.load %arg6[%c0_9, %c0_10, %c0_11] : memref<1x32x128xf32, #tpu.memory_space<vmem>>, vector<1x32x128xf32>
      tpu.vector_store %arg6[%c0_9, %c0_10, %c0_11], %18 {strides = array<i32>} : memref<1x32x128xf32, #tpu.memory_space<vmem>>, vector<1x32x128xf32>,
    } else {
    }
    %c1_i32 = arith.constant 1 : i32
    %3 = arith.muli %arg1, %c1_i32 : i32
    %4 = arith.addi %3, %arg2 : i32
    %c128_i32 = arith.constant 128 : i32
    %5 = arith.muli %4, %c128_i32 : i32
    %c128_i32_1 = arith.constant 128 : i32
    %6 = arith.addi %5, %c128_i32_1 : i32
    %c256_i32 = arith.constant 256 : i32
    %7 = arith.cmpi sle, %6, %c256_i32 : i32
    %8 = arith.extui %7 : i1 to i32
    %c0_i32_2 = arith.constant 0 : i32
    %9 = arith.cmpi ne, %8, %c0_i32_2 : i32
    scf.if %9 {
      %c0 = arith.constant 0 : index
      %c0_6 = arith.constant 0 : index
      %c0_7 = arith.constant 0 : index
      %16 = vector.load %arg5[%c0, %c0_6, %c0_7] : memref<1x32x128xf32, #tpu.memory_space<vmem>>, vector<1x32x128xf32>
      %c0_8 = arith.constant 0 : index
      %c0_9 = arith.constant 0 : index
      %c0_10 = arith.constant 0 : index
      %17 = vector.load %arg6[%c0_8, %c0_9, %c0_10] : memref<1x32x128xf32, #tpu.memory_space<vmem>>, vector<1x32x128xf32>
      %c0_i32_11 = arith.constant 0 : i32
      %c128_i32_12 = arith.constant 128 : i32
      %18 = arith.muli %c0_i32_11, %c128_i32_12 : i32
      %19 = tpu.assume_multiple %18, 128 : i32
      %c0_13 = arith.constant 0 : index
      %c0_14 = arith.constant 0 : index
      %20 = arith.index_cast %19 : i32 to index
      %21 = vector.load %arg3[%c0_13, %c0_14, %20] : memref<1x32x128xf32, #tpu.memory_space<vmem>>, vector<1x32x128xf32>
      %22 = arith.addf %16, %21 : vector<1x32x128xf32>
      %23 = arith.mulf %21, %21 : vector<1x32x128xf32>
      %24 = arith.addf %17, %23 : vector<1x32x128xf32>
      %c1_i32_15 = arith.constant 1 : i32
      %c0_16 = arith.constant 0 : index
      %c0_17 = arith.constant 0 : index
      %c0_18 = arith.constant 0 : index
      %25 = vector.load %arg5[%c0_16, %c0_17, %c0_18] : memref<1x32x128xf32, #tpu.memory_space<vmem>>, vector<1x32x128xf32>
      tpu.vector_store %arg5[%c0_16, %c0_17, %c0_18], %22 {strides = array<i32>} : memref<1x32x128xf32, #tpu.memory_space<vmem>>, vector<1x32x128xf32>,
      %c0_19 = arith.constant 0 : index
      %c0_20 = arith.constant 0 : index
      %c0_21 = arith.constant 0 : index
      %26 = vector.load %arg6[%c0_19, %c0_20, %c0_21] : memref<1x32x128xf32, #tpu.memory_space<vmem>>, vector<1x32x128xf32>
      tpu.vector_store %arg6[%c0_19, %c0_20, %c0_21], %24 {strides = array<i32>} : memref<1x32x128xf32, #tpu.memory_space<vmem>>, vector<1x32x128xf32>,
    } else {
    }
    %true = arith.constant true
    %10 = arith.xori %7, %true : i1
    %11 = arith.extui %10 : i1 to i32
    %c0_i32_3 = arith.constant 0 : i32
    %12 = arith.cmpi ne, %11, %c0_i32_3 : i32
    scf.if %12 {
      %16 = tpu.iota {dimensions = array<i32: 2>} : vector<1x1x128xi32>
      %c0 = arith.constant 0 : index
      %c0_6 = arith.constant 0 : index
      %c0_7 = arith.constant 0 : index
      %17 = vector.load %arg5[%c0, %c0_6, %c0_7] : memref<1x32x128xf32, #tpu.memory_space<vmem>>, vector<1x32x128xf32>
      %c0_8 = arith.constant 0 : index
      %c0_9 = arith.constant 0 : index
      %c0_10 = arith.constant 0 : index
      %18 = vector.load %arg6[%c0_8, %c0_9, %c0_10] : memref<1x32x128xf32, #tpu.memory_space<vmem>>, vector<1x32x128xf32>
      %c0_i32_11 = arith.constant 0 : i32
      %c128_i32_12 = arith.constant 128 : i32
      %19 = arith.muli %c0_i32_11, %c128_i32_12 : i32
      %20 = tpu.assume_multiple %19, 128 : i32
      %c0_13 = arith.constant 0 : index
      %c0_14 = arith.constant 0 : index
      %21 = arith.index_cast %20 : i32 to index
      %22 = vector.load %arg3[%c0_13, %c0_14, %21] : memref<1x32x128xf32, #tpu.memory_space<vmem>>, vector<1x32x128xf32>
      %c128_i32_15 = arith.constant 128 : i32
      %23 = arith.muli %c0_i32_11, %c128_i32_15 : i32
      %24 = arith.addi %5, %23 : i32
      %c256_i32_16 = arith.constant 256 : i32
      %25 = arith.subi %c256_i32_16, %24 : i32
      %26 = vector.broadcast %25 : i32 to vector<1x1x128xi32>
      %27 = arith.cmpi slt, %16, %26 : vector<1x1x128xi32>
      %cst = arith.constant 0.000000e+00 : f32
      %28 = vector.shape_cast %27 : vector<1x1x128xi1> to vector<1x1x128xi1>
      %29 = vector.broadcast %28 : vector<1x1x128xi1> to vector<1x32x128xi1>
      %30 = vector.broadcast %cst : f32 to vector<1x32x128xf32>
      %31 = arith.select %29, %22, %30 : vector<1x32x128xi1>, vector<1x32x128xf32>
      %32 = arith.addf %17, %31 : vector<1x32x128xf32>
      %33 = arith.mulf %31, %31 : vector<1x32x128xf32>
      %34 = arith.addf %18, %33 : vector<1x32x128xf32>
      %c1_i32_17 = arith.constant 1 : i32
      %c0_18 = arith.constant 0 : index
      %c0_19 = arith.constant 0 : index
      %c0_20 = arith.constant 0 : index
      %35 = vector.load %arg5[%c0_18, %c0_19, %c0_20] : memref<1x32x128xf32, #tpu.memory_space<vmem>>, vector<1x32x128xf32>
      tpu.vector_store %arg5[%c0_18, %c0_19, %c0_20], %32 {strides = array<i32>} : memref<1x32x128xf32, #tpu.memory_space<vmem>>, vector<1x32x128xf32>,
      %c0_21 = arith.constant 0 : index
      %c0_22 = arith.constant 0 : index
      %c0_23 = arith.constant 0 : index
      %36 = vector.load %arg6[%c0_21, %c0_22, %c0_23] : memref<1x32x128xf32, #tpu.memory_space<vmem>>, vector<1x32x128xf32>
      tpu.vector_store %arg6[%c0_21, %c0_22, %c0_23], %34 {strides = array<i32>} : memref<1x32x128xf32, #tpu.memory_space<vmem>>, vector<1x32x128xf32>,
    } else {
    }
    %c0_i32_4 = arith.constant 0 : i32
    %13 = arith.cmpi eq, %arg2, %c0_i32_4 : i32
    %14 = arith.extui %13 : i1 to i32
    %c0_i32_5 = arith.constant 0 : i32
    %15 = arith.cmpi ne, %14, %c0_i32_5 : i32
    scf.if %15 {
      %c0 = arith.constant 0 : index
      %c0_6 = arith.constant 0 : index
      %c0_7 = arith.constant 0 : index
      %16 = vector.load %arg5[%c0, %c0_6, %c0_7] : memref<1x32x128xf32, #tpu.memory_space<vmem>>, vector<1x32x128xf32>
      %cst = arith.constant dense<0.000000e+00> : vector<1x32xf32>
      %17 = vector.multi_reduction <add>, %16, %cst [2] : vector<1x32x128xf32> to vector<1x32xf32>
      %c0_8 = arith.constant 0 : index
      %c0_9 = arith.constant 0 : index
      %c0_10 = arith.constant 0 : index
      %c0_11 = arith.constant 0 : index
      %18 = vector.load %arg4[%c0_8, %c0_9, %c0_10, %c0_11] : memref<1x1x2x32xf32, #tpu.memory_space<vmem>>, vector<1x1x1x32xf32>
      %19 = vector.shape_cast %18 : vector<1x1x1x32xf32> to vector<1x32xf32>
      %20 = vector.shape_cast %17 : vector<1x32xf32> to vector<1x1x1x32xf32>
      tpu.vector_store %arg4[%c0_8, %c0_9, %c0_10, %c0_11], %20 {strides = array<i32>} : memref<1x1x2x32xf32, #tpu.memory_space<vmem>>, vector<1x1x1x32xf32>,
      %c0_12 = arith.constant 0 : index
      %c0_13 = arith.constant 0 : index
      %c0_14 = arith.constant 0 : index
      %21 = vector.load %arg6[%c0_12, %c0_13, %c0_14] : memref<1x32x128xf32, #tpu.memory_space<vmem>>, vector<1x32x128xf32>
      %cst_15 = arith.constant dense<0.000000e+00> : vector<1x32xf32>
      %22 = vector.multi_reduction <add>, %21, %cst_15 [2] : vector<1x32x128xf32> to vector<1x32xf32>
      %c0_16 = arith.constant 0 : index
      %c0_17 = arith.constant 0 : index
      %c1 = arith.constant 1 : index
      %c0_18 = arith.constant 0 : index
      %23 = vector.load %arg4[%c0_16, %c0_17, %c1, %c0_18] : memref<1x1x2x32xf32, #tpu.memory_space<vmem>>, vector<1x1x1x32xf32>
      %24 = vector.shape_cast %23 : vector<1x1x1x32xf32> to vector<1x32xf32>
      %25 = vector.shape_cast %22 : vector<1x32xf32> to vector<1x1x1x32xf32>
      tpu.vector_store %arg4[%c0_16, %c0_17, %c1, %c0_18], %25 {strides = array<i32>} : memref<1x1x2x32xf32, #tpu.memory_space<vmem>>, vector<1x1x1x32xf32>,
    } else {
    }
    return
  }
  func.func @transform_0(%arg0: i32, %arg1: i32, %arg2: i32) -> (i32, i32, i32) {
    %c1_i32 = arith.constant 1 : i32
    %0 = arith.muli %arg1, %c1_i32 : i32
    %1 = arith.addi %0, %arg2 : i32
    %c0_i32 = arith.constant 0 : i32
    %c0_i32_0 = arith.constant 0 : i32
    return %arg0, %c0_i32, %1 : i32, i32, i32
  }
  func.func @transform_1(%arg0: i32, %arg1: i32, %arg2: i32) -> (i32, i32, i32, i32) {
    %c0_i32 = arith.constant 0 : i32
    %c0_i32_0 = arith.constant 0 : i32
    %c0_i32_1 = arith.constant 0 : i32
    return %arg0, %arg1, %c0_i32, %c0_i32_0 : i32, i32, i32, i32
  }
}

</mosaic_0001>

<bundles_post_ra>
// kernel: tpu_custom_call.1
= control target key start
LH: loop header
LB: loop body
LE: loop exit
PB: predicated region body
PF: predicated region fallthrough
CT: control target
= control target key end

     0   :  { %6 = vsyncpa [#allocation5], 0  ;;  %s843_s0 = inlined_call_operand.hbm [shape: f32[2,32,256], index: 0, kind: input, shape index: {}]   ;;  %s844_s1 = inlined_call_operand.hbm [shape: f32[2,2,2,32], index: 1, kind: output, shape index: {}]  }
   0x1   :  { %8 = vsyncpa [#allocation5 + $0x1], 0 }
   0x2   :  { %9 = vsyncpa [#allocation6], 0 }
   0x3   :  { %11 = vsyncpa [#allocation6 + $0x1], 0  ;;  %s676_s6 = smov 0   ;;  %s678_s7 = smov 0  }
   0x4   :  { %s680_s8 = smov 0   ;;  %s682_s9 = smov 0  }
   0x5   :  { %s684_s10 = smov 0   ;;  %s686_s11 = smov 0  }
   0x6   :  { %s688_s12 = smov 0   ;;  %s690_s13 = smov 0  }
   0x7 LB: > { %s432_s14 = sadd.s32 4294967295, %s660_s13   ;;  %s433_s15 = sadd.s32 4294967294, %s660_s13   ;;  %s660_s13 = sphi %s690_s13, %s17_s13   ;;  %s656_s12 = sphi %s688_s12, %s858_s12   ;;  %s652_s11 = sphi %s686_s11, %s857_s11   ;;  %s648_s10 = sphi %s684_s10, %s856_s10   ;;  %s644_s9 = sphi %s682_s9, %s855_s9   ;;  %s640_s8 = sphi %s680_s8, %s854_s8   ;;  %s636_s7 = sphi %s678_s7, %s853_s7   ;;  %s632_s6 = sphi %s676_s6, %s852_s6  }
   0x8   : > { %s32_s16 = sadd.s32 1, %s652_s11  ;;  %s36_s17 = sadd.s32 1, %s656_s12 }
   0x9   : > { %p34_p0 = scmp.ge.s32.totalorder %s32_s16, 2  ;;  %s47_s18 = sadd.s32 1, %s640_s8 }
   0xa   : > { %p54_p1 = scmp.ne.s32.totalorder %s640_s8, %s636_s7  ;;  %p55_p2 = scmp.eq.s32.totalorder %s660_s13, 0 }
   0xb   : > { %s860_s16 = smov (%p34_p0, %s32_s16), 0  ;;  %s862_s17 = smov (!%p34_p0, %s36_s17), %s656_s12 }
   0xc   : > { %s43_s19 = ssub.s32 %s652_s11, %s860_s16  ;;  %p729_p3 = por %p55_p2, %p54_p1 }
   0xd   : > { %p38_p4 = scmp.ge.s32.totalorder %s862_s17, 2  ;;  %p60_p5 = scmp.ne.s32.totalorder %s636_s7, %s632_s6 }
   0xe   : > { %p61_p6 = scmp.eq.s32.totalorder %s432_s14, 0  ;;  %p86_p7 = scmp.eq.s32.totalorder %s432_s14, 3 }
   0xf   : > { %s864_s17 = smov (%p38_p4, %s862_s17), 0  ;;  %p92_p10 = scmp.eq.s32.totalorder %s433_s15, 3 }
  0x10   : > { %847 = sst [smem:[#allocation10_spill]] %s864_s17  ;;  %p737_p8 = por %p61_p6, %p60_p5 }
  0x11   : > { %p741_p9 = por %p86_p7, %p54_p1  ;;  %s42_s23 = ssub.s32 %s656_s12, %s864_s17 }
  0x12   : > { %s44_s24 = sor.u32 %s43_s19, %s42_s23  ;;  %p747_p12 = por %p92_p10, %p60_p5 }
  0x13   : > { %p45_p11 = scmp.eq.s32.totalorder %s44_s24, 0  ;;  %p462_p13 = scmp.lt.s32.totalorder %s660_s13, 4 }
  0x14   : > { %s112_s26 = sand.u32 1, %s640_s8   ;;  %s437_s29 = sshll.u32 %s656_s12, 3 }
  0x15   : > { %s754_s27 = scalar_select %p45_p11, %s640_s8, %s47_s18  }
  0x16   : > { %s436_s28 = sshll.u32 %s112_s26, 5  ;;  %s121_s30 = sadd.s32 %s652_s11, %s437_s29 }
  0x17   : > { %s116_s2 = scalar_lea.vmem [#allocation4], %s436_s28  ;;  %s438_s4 = sshll.u32 %s121_s30, 3 }
  0x18   : > { %s126_s3 = sshll.u32 %s116_s2, 4  ;;  %s123_s15 = scalar_lea.hbm %s843_s0, %s438_s4  ;;  %s127_s3 = int_to_ptr.vmem [resolvable:$true] %s126_s3 }
  0x19   : > { %p455_p0 = pnand %p462_p13, %p729_p3  ;;  %s124_s19 = sshll.u32 %s123_s15, 4  ;;  %s125_s19 = int_to_ptr.hbm [resolvable:$true] %s124_s19 }
  0x1a   : > { %s113_s23 = scalar_lea.sflag [#allocation5], %s112_s26  ;;  %s662_s18 = smov 256  }
  0x1b   : > { %s663_s24 = smov 128   ;;  %s664_s17 = smov 8  }
  0x1c   : > { %457 = dma.hbm_to_vmem [thread:$0]  (!%p455_p0), %s125_s19, 512, %s127_s3, %s113_s23, %s662_s18, %s663_s24, %s664_s17  }
  0x1d   : > { %p439_p1 = scmp.ge.s32.totalorder %s660_s13, 1  ;;  %p134_p2 = scmp.lt.s32.totalorder %s660_s13, 5 }
  0x1f   : > { %p135_p4 = pnand %p439_p1, %p134_p2 }
  0x20   : > { %s766_s28 = sand.u32 (!%p135_p4), 1, %s636_s7  }
  0x21   : > { %138 = sbr.rel (%p135_p4) target bundleno = 224 (0xe0), region = 24  ;;  %s440_s29 = sshll.u32 (!%p135_p4), %s766_s28, 5 }
  0x22   : > { %s141_s20 = scalar_lea.sflag (!%p135_p4), [#allocation5], %s766_s28  ;;  %s770_s30 = scalar_lea.vmem (!%p135_p4), [#allocation4], %s440_s29 }
  0x26   : > { %623 = dma.done.wait (%p737_p8), %s141_s20, 512  }
  0x27   : > { %625 = vsyncadd (%p737_p8), %s141_s20, 4294966784  ;;  %s441_s17 = sshll.u32 %s766_s28, 1  ;;  %s442_s26 = sshll.u32 %s644_s9, 7  ;;  %v665_v0 = vmov 0.0  }
  0x28   : > { %169 = vst [vmem:[#allocation2 + $0x10] sm:$0xff] %v665_v0  ;;  %s780_s2 = sadd.s32 128, %s442_s26  ;;  %s782_s3 = scalar_lea.vmem [#allocation7], %s441_s17 }
  0x29   : > { %170 = vst [vmem:[#allocation2] sm:$0xff] %v665_v0  ;;  %p443_p3 = scmp.gt.s32.totalorder %s780_s2, 256 }
  0x2a   : > { %171 = vst [vmem:[#allocation2 + $0x18] sm:$0xff] %v665_v0 }
  0x2b   : > { %172 = vst [vmem:[#allocation2 + $0x8] sm:$0xff] %v665_v0  ;;  %183 = sbr.rel (%p443_p3) target bundleno = 59 (0x3b), region = 36 }
  0x2c   : > { %173 = vst [vmem:[#allocation3] sm:$0xff] %v665_v0 }
  0x2d   : > { %174 = vst [vmem:[#allocation3 + $0x18] sm:$0xff] %v665_v0 }
  0x2e   : > { %175 = vst [vmem:[#allocation3 + $0x8] sm:$0xff] %v665_v0 }
  0x2f   : > { %176 = vst [vmem:[#allocation3 + $0x10] sm:$0xff] %v665_v0 }
  0x30   : > { %v184_v1 = vld [vmem:[#allocation2 + $0x10] sm:$0xff]  ;;  %v192_v2 = vld [vmem:[%s770_s30] sm:$0xff]  ;;  %v193_v5 = vld [vmem:[%s770_s30 + $0x8] sm:$0xff] }
  0x31   : > { %v185_v3 = vld [vmem:[#allocation2] sm:$0xff]  ;;  %v196_v4 = vadd.f32 %v192_v2, %v184_v1  ;;  %v186_v6 = vld [vmem:[#allocation2 + $0x18] sm:$0xff]  ;;  %v194_v7 = vld [vmem:[%s770_s30 + $0x10] sm:$0xff]  ;;  %v200_v8 = vmul.f32 %v192_v2, %v192_v2  ;;  %v201_v14 = vmul.f32 %v193_v5, %v193_v5 }
  0x32   : > { %v197_v9 = vadd.f32 %v193_v5, %v185_v3  ;;  %v198_v10 = vadd.f32 %v194_v7, %v186_v6  ;;  %v187_v11 = vld [vmem:[#allocation2 + $0x8] sm:$0xff]  ;;  %v195_v12 = vld [vmem:[%s770_s30 + $0x18] sm:$0xff]  ;;  %v202_v15 = vmul.f32 %v194_v7, %v194_v7 }
  0x33   : > { %v188_v13 = vld [vmem:[#allocation3] sm:$0xff]  ;;  %208 = vst [vmem:[#allocation2 + $0x10] sm:$0xff] %v196_v4  ;;  %v199_v16 = vadd.f32 %v195_v12, %v187_v11  ;;  %v203_v21 = vmul.f32 %v195_v12, %v195_v12 }
  0x34   : > { %v204_v17 = vadd.f32 %v200_v8, %v188_v13  ;;  %v189_v18 = vld [vmem:[#allocation3 + $0x18] sm:$0xff]  ;;  %209 = vst [vmem:[#allocation2] sm:$0xff] %v197_v9 }
  0x35   : > { %v190_v19 = vld [vmem:[#allocation3 + $0x8] sm:$0xff]  ;;  %v205_v22 = vadd.f32 %v201_v14, %v189_v18  ;;  %210 = vst [vmem:[#allocation2 + $0x18] sm:$0xff] %v198_v10 }
  0x36   : > { %v191_v20 = vld [vmem:[#allocation3 + $0x10] sm:$0xff]  ;;  %v206_v23 = vadd.f32 %v202_v15, %v190_v19  ;;  %211 = vst [vmem:[#allocation2 + $0x8] sm:$0xff] %v199_v16 }
  0x37   : > { %v207_v24 = vadd.f32 %v203_v21, %v191_v20  ;;  %212 = vst [vmem:[#allocation3] sm:$0xff] %v204_v17 }
  0x38   : > { %213 = vst [vmem:[#allocation3 + $0x18] sm:$0xff] %v205_v22 }
  0x39   : > { %214 = vst [vmem:[#allocation3 + $0x8] sm:$0xff] %v206_v23 }
  0x3a   : > { %215 = vst [vmem:[#allocation3 + $0x10] sm:$0xff] %v207_v24 }
  0x3b PF: > { %p444_p5 = scmp.le.s32.totalorder %s780_s2, 256 }
  0x3c   : > { %s234_s21 = ssub.s32 (!%p444_p5), 256, %s442_s26 }
  0x3d   : > { %219 = sbr.rel (%p444_p5) target bundleno = 82 (0x52), region = 40 }
  0x42   : > { %v220_v25 = vlaneseq  ;;  %v222_v26 = vld [vmem:[#allocation2 + $0x10] sm:$0xff]  ;;  %v230_v27 = vld [vmem:[%s770_s30] sm:$0xff]  ;;  %v235_v28 = vstv %s234_s21  ;;  %v231_v30 = vld [vmem:[%s770_s30 + $0x8] sm:$0xff] }
  0x43   : > { %v232_v31 = vld [vmem:[%s770_s30 + $0x10] sm:$0xff]  ;;  %v233_v32 = vld [vmem:[%s770_s30 + $0x18] sm:$0xff]  ;;  %v223_v33 = vld [vmem:[#allocation2] sm:$0xff] }
  0x44   : > { %v221_v29 = vand.u32 127, %v220_v25  ;;  %v224_v34 = vld [vmem:[#allocation2 + $0x18] sm:$0xff]  ;;  %v225_v35 = vld [vmem:[#allocation2 + $0x8] sm:$0xff]  ;;  %v226_v44 = vld [vmem:[#allocation3] sm:$0xff] }
  0x45   : > { %v227_v45 = vld [vmem:[#allocation3 + $0x18] sm:$0xff]  ;;  %v228_v48 = vld [vmem:[#allocation3 + $0x8] sm:$0xff]  ;;  %v229_v51 = vld [vmem:[#allocation3 + $0x10] sm:$0xff] }
  0x46   : > { %vm236_vm0 = vcmp.lt.s32.totalorder %v221_v29, %v235_v28 }
  0x47   : > { %v239_v36 = vsel %vm236_vm0, %v230_v27, 0.0  ;;  %v240_v37 = vsel %vm236_vm0, %v231_v30, 0.0  ;;  %v241_v38 = vsel %vm236_vm0, %v232_v31, 0.0  ;;  %v242_v39 = vsel %vm236_vm0, %v233_v32, 0.0 }
  0x48   : > { %v243_v40 = vadd.f32 %v239_v36, %v222_v26  ;;  %v244_v41 = vadd.f32 %v240_v37, %v223_v33  ;;  %v245_v42 = vadd.f32 %v241_v38, %v224_v34  ;;  %v246_v43 = vadd.f32 %v242_v39, %v225_v35 }
  0x49   : > { %v247_v46 = vmul.f32 %v239_v36, %v239_v36  ;;  %v248_v47 = vmul.f32 %v240_v37, %v240_v37  ;;  %v249_v49 = vmul.f32 %v241_v38, %v241_v38  ;;  %v250_v50 = vmul.f32 %v242_v39, %v242_v39 }
  0x4a   : > { %255 = vst [vmem:[#allocation2 + $0x10] sm:$0xff] %v243_v40 }
  0x4b   : > { %256 = vst [vmem:[#allocation2] sm:$0xff] %v244_v41  ;;  %v251_v52 = vadd.f32 %v247_v46, %v226_v44  ;;  %v252_v53 = vadd.f32 %v248_v47, %v227_v45  ;;  %v253_v54 = vadd.f32 %v249_v49, %v228_v48  ;;  %v254_v55 = vadd.f32 %v250_v50, %v229_v51 }
  0x4c   : > { %257 = vst [vmem:[#allocation2 + $0x18] sm:$0xff] %v245_v42 }
  0x4d   : > { %258 = vst [vmem:[#allocation2 + $0x8] sm:$0xff] %v246_v43 }
  0x4e   : > { %259 = vst [vmem:[#allocation3] sm:$0xff] %v251_v52 }
  0x4f   : > { %260 = vst [vmem:[#allocation3 + $0x18] sm:$0xff] %v252_v53 }
  0x50   : > { %261 = vst [vmem:[#allocation3 + $0x8] sm:$0xff] %v253_v54 }
  0x51   : > { %262 = vst [vmem:[#allocation3 + $0x10] sm:$0xff] %v254_v55 }
  0x52 PF: > { %v266_v57 = vld [vmem:[#allocation2 + $0x10] sm:$0xff]  ;;  %v267_v60 = vld [vmem:[#allocation2] sm:$0xff]  ;;  %v282_v2 = vlaneseq  ;;  %s446_s4 = sshll.u32 %s648_s10, 1  ;;  %vm287_vm1 = vcmask 130112   ;;  %vm291_vm2 = vcmask 195712   ;;  %vm295_vm3 = vcmask 261312  }
  0x53   : > { %v268_v58 = vld [vmem:[#allocation2 + $0x18] sm:$0xff]  ;;  %270 = vadd.xlane.f32.xlu0 %v266_v57  ;;  %s336_s5 = sadd.s32 %s644_s9, %s446_s4  ;;  %s340_s9 = sshll.u32 %s782_s3, 4  ;;  %vm298_vm4 = vcmask 253952   ;;  %s341_s9 = int_to_ptr.vmem [resolvable:$true] %s340_s9 }
  0x54   : > { %274 = vadd.xlane.f32.xlu2 %v268_v58  ;;  %v269_v63 = vld [vmem:[#allocation2 + $0x8] sm:$0xff]  ;;  %v283_v4 = vand.u32 127, %v282_v2  ;;  %s447_s14 = sshll.u32 %s336_s5, 1  ;;  %s326_s18 = scalar_lea.sflag [#allocation6], %s766_s28 }
  0x55   : > { %v300_v56 = vld [vmem:[#allocation3] sm:$0xff]  ;;  %s338_s23 = scalar_lea.hbm %s844_s1, %s447_s14  ;;  %s582_s17 = scalar_lea.hbm %s844_s1, 8 }
  0x56   : > { %304 = vadd.xlane.f32.xlu1 %v300_v56  ;;  %v301_v59 = vld [vmem:[#allocation3 + $0x18] sm:$0xff]  ;;  %v285_v5 = vadd.s32 4294967288, %v283_v4  ;;  %v289_v11 = vadd.s32 4294967280, %v283_v4  ;;  %v293_v14 = vadd.s32 4294967272, %v283_v4  ;;  %s342_s10 = sshll.u32 %s338_s23, 4  ;;  %s343_s10 = int_to_ptr.hbm [resolvable:$true] %s342_s10 }
  0x57   : > { %v302_v61 = vld [vmem:[#allocation3 + $0x8] sm:$0xff]  ;;  %s576_s24 = sshra.s32 %s343_s10, 4  ;;  %s577_s24 = int_to_ptr.hbm [resolvable:$true] %s576_s24 }
  0x58   : > { %v303_v62 = vld [vmem:[#allocation3 + $0x10] sm:$0xff]  ;;  %s578_s29 = scalar_lea.hbm %s577_s24, 2  ;;  %p583_p10 = scmp.lt.s32.totalorder %s577_s24, %s844_s1 }
  0x59   : > { %p579_p6 = scmp.ne.s32.totalorder %s577_s24, %s578_s29  ;;  %p584_p11 = scmp.lt.s32.totalorder %s582_s17, %s578_s29 }
  0x5b   : > { %272 = vadd.xlane.f32.xlu0 %v267_v60  ;;  %p580_p7 = pnand %p579_p6, %p741_p9  ;;  %p585_p13 = por %p584_p11, %p583_p10 }
  0x5c   : > { %308 = vadd.xlane.f32.xlu2 %v302_v61 }
  0x5d   : > { %p581_p8 = pneg %p580_p7 }
  0x5e   : > { %306 = vadd.xlane.f32.xlu1 %v301_v59 }
  0x5f   : > { %p586_p0 = pnand %p585_p13, %p581_p8 }
  0x63   : > { %276 = vadd.xlane.f32.xlu0 %v269_v63 }
  0x66   : > { %310 = vadd.xlane.f32.xlu1 %v303_v62 }
  0xc6   : > { %v271_v1 = vpop.xlane.xlu0 %270 }
  0xc7   : > { %v275_v3 = vpop.xlane.xlu2 %274  ;;  %v284_v13 = vperm.slane %v271_v1, %v283_v4 }
  0xc8   : > { %v290_v18 = vperm.slane %v275_v3, %v289_v11 }
  0xc9   : > { %v305_v0 = vpop.xlane.xlu1 %304 }
  0xca   : > { %v316_v12 = vperm.slane %v305_v0, %v283_v4 }
  0xce   : > { %v273_v7 = vpop.xlane.xlu0 %272 }
  0xcf   : > { %v286_v9 = vperm.slane %v273_v7, %v285_v5  ;;  %v309_v10 = vpop.xlane.xlu2 %308 }
  0xd0   : > { %v319_v15 = vperm.slane %v309_v10, %v289_v11 }
  0xd1   : > { %v307_v6 = vpop.xlane.xlu1 %306  ;;  %v288_v17 = vsel %vm287_vm1, %v286_v9, %v284_v13 }
  0xd2   : > { %v317_v8 = vperm.slane %v307_v6, %v285_v5  ;;  %v292_v24 = vsel %vm291_vm2, %v290_v18, %v288_v17 }
  0xd4   : > { %v318_v16 = vsel %vm287_vm1, %v317_v8, %v316_v12 }
  0xd5   : > { %v320_v23 = vsel %vm291_vm2, %v319_v15, %v318_v16 }
  0xd6   : > { %v277_v20 = vpop.xlane.xlu0 %276 }
  0xd7   : > { %v294_v22 = vperm.slane %v277_v20, %v293_v14 }
  0xd9   : > { %v311_v19 = vpop.xlane.xlu1 %310  ;;  %v296_v26 = vsel %vm295_vm3, %v294_v22, %v292_v24 }
  0xda   : > { %v321_v21 = vperm.slane %v311_v19, %v293_v14  ;;  %299 = vst.msk [vmem:[%s782_s3] sm:$0x1] %vm298_vm4, %v296_v26 }
  0xdc   : > { %v322_v25 = vsel %vm295_vm3, %v321_v21, %v320_v23 }
  0xdd   : > { %324 = vst.msk [vmem:[%s782_s3 + $0x1] sm:$0x1] %vm298_vm4, %v322_v25 }
  0xde   : > { %589 = shalt.err (!%p586_p0)
}
  0xdf   : > { %452 = dma.vmem_to_hbm [thread:$0]  (%p741_p9), %s341_s9, 32, %s343_s10, %s326_s18  }
  0xe0 PF: > { %p463_p1 = scmp.ge.s32.totalorder %s660_s13, 2  ;;  %s354_s28 = sand.u32 1, %s632_s6  }
  0xe1   : > { %s355_s3 = scalar_lea.sflag [#allocation6], %s354_s28 }
  0xe2   : > { %p459_p2 = pnand %p463_p1, %p747_p12 }
  0xe4   : > { %p460_p4 = pneg %p459_p2 }
  0xe6   : > { %627 = dma.done.wait (%p460_p4), %s355_s3, 32  }
  0xe7   : > { %629 = vsyncadd (%p460_p4), %s355_s3, 4294967264  ;;  %s17_s13 = sadd.s32 1, %s660_s13   ;;  %s851_s22 = sld [smem:[#allocation10_spill]] }
  0xe8   : > { %p14_p3 = scmp.ge.s32.totalorder %s17_s13, 6   ;;  %s852_s6 = smov %s636_s7 }
  0xe9   : > { %s853_s7 = smov %s640_s8  ;;  %s854_s8 = smov %s754_s27 }
  0xea   : > { %s855_s9 = smov %s652_s11  ;;  %s856_s10 = smov %s656_s12 }
  0xeb   : > { %s857_s11 = smov %s860_s16  ;;  %16 = sbr.rel (!%p14_p3) target bundleno = 7 (0x7), region = 85 }
  0xed   : > { %s858_s12 = smov %s851_s22 }
  0xf0   :  { %361 = vsyncpa [#allocation5], 1 }
  0xf1   :  { %363 = vsyncpa [#allocation5 + $0x1], 1 }
  0xf2   :  { %364 = vsyncpa [#allocation6], 1 }
  0xf3   :  { %366 = vsyncpa [#allocation6 + $0x1], 1 }

</bundles_post_ra>
